<compile_context>
chip_gen: v7x
topology: tpu7x:2x2x1
jax: 0.10.0
libtpu: 0.0.40
codegen_flags: <defaults>
</compile_context>

<pallas_src>
import jax
import jax.numpy as jnp
from jax.experimental import pallas as pl
from jax.experimental.pallas import tpu as pltpu


def _attn_kernel(h_ref, w_ref, b_ref, ctx_ref, attn_ref):
    # h_ref:    (Bt, S, H)  hidden-state block (input dtype)
    # w_ref:    (1, H)      linear weight (VMEM)
    # b_ref:    (1,)        linear bias (SMEM scalar, f32)
    # ctx_ref:  (Bt, H)     context-vector output block
    # attn_ref: (Bt, S)     attention-weight output block (lane-dense)
    h = h_ref[...]                                   # (Bt, S, H), input dtype
    w = w_ref[...].astype(h.dtype)                   # (1, H)
    bias = b_ref[0]                                  # scalar from SMEM (f32)

    # Linear(H, 1): VPU multiply + lane reduce over H with f32 accumulation.
    # Result is lane-dense (Bt, S) -- no degenerate N=1 MXU matmul.
    scores = jnp.sum(h * w[None, :, :], axis=-1, dtype=jnp.float32) + bias

    # Softmax over the sequence axis (last axis here -> lane reduce).
    m = jnp.max(scores, axis=-1, keepdims=True)               # (Bt, 1)
    e = jnp.exp(scores - m)                                    # (Bt, S)
    denom = jnp.sum(e, axis=-1, keepdims=True)                 # (Bt, 1)
    attn = e * pl.reciprocal(denom, approx=True)               # (Bt, S), EUP vrcp

    # Weighted sum over the sequence axis -> (Bt, H); attn is f32 so the
    # product promotes to f32 even for bf16 hidden states.
    ctx = jnp.sum(attn[:, :, None] * h, axis=1)                # (Bt, H), f32

    ctx_ref[...] = ctx.astype(ctx_ref.dtype)
    attn_ref[...] = attn.astype(attn_ref.dtype)


def _choose_batch_block(B, S, H, itemsize):
    """Pick Bt: (Bt == B) or (Bt % 8 == 0 and B % Bt == 0), block <= budget,
    preferring >= 2 grid steps so both cores / pipelining get work."""
    budget = 6 * 1024 * 1024                     # bytes for one input block
    row_bytes = max(1, S * H * itemsize)
    cands = sorted({d for d in range(8, B + 1, 8) if B % d == 0} | {B})
    fitting = [d for d in cands if d * row_bytes <= budget]
    if not fitting:
        return cands[0]                          # smallest legal block
    multi = [d for d in fitting if B // d >= 2]
    return (multi[-1] if multi else fitting[-1])


def _vmem_limit_bytes(Bt, S, H, itemsize):
    in_blk = Bt * S * H * itemsize
    out_blk = Bt * (H + S) * itemsize
    f32_tmp = Bt * S * H * 4                     # f32 intermediates
    # double-buffered in/out blocks + intermediates + headroom
    need = 2 * (in_blk + out_blk) + 2 * f32_tmp + (8 << 20)
    return int(min(max(need, 16 << 20), 56 << 20))


def common_attention_layer(hidden_states, weight, bias):
    """hidden_states: (B, S, H); weight: (1, H); bias: (1,).

    Returns (context_vector (B, H), attn_weights (B, S, 1))."""
    B, S, H = hidden_states.shape
    itemsize = jnp.dtype(hidden_states.dtype).itemsize
    Bt = _choose_batch_block(B, S, H, itemsize)
    grid = (B // Bt,)

    ctx, attn2d = pl.pallas_call(
        _attn_kernel,
        out_shape=(
            jax.ShapeDtypeStruct((B, H), hidden_states.dtype),
            jax.ShapeDtypeStruct((B, S), hidden_states.dtype),
        ),
        grid_spec=pltpu.PrefetchScalarGridSpec(
            num_scalar_prefetch=0,
            grid=grid,
            in_specs=[
                pl.BlockSpec((Bt, S, H), lambda b: (b, 0, 0)),
                pl.BlockSpec((1, H), lambda b: (0, 0)),
                pl.BlockSpec(memory_space=pltpu.MemorySpace.SMEM),
            ],
            out_specs=[
                pl.BlockSpec((Bt, H), lambda b: (b, 0)),
                pl.BlockSpec((Bt, S), lambda b: (b, 0)),
            ],
        ),
        compiler_params=pltpu.CompilerParams(
            dimension_semantics=("parallel",),
            vmem_limit_bytes=_vmem_limit_bytes(Bt, S, H, itemsize),
        ),
    )(hidden_states, weight, bias.astype(jnp.float32))

    # Lane-dense (B, S) kernel output -> (B, S, 1) to match the PyTorch module.
    attn = attn2d.reshape(B, S, 1)
    return ctx, attn


def _reference(hidden_states, weight, bias):
    scores = jnp.einsum("bsh,oh->bso", hidden_states, weight) + bias
    attn = jax.nn.softmax(scores, axis=1)
    ctx = jnp.sum(attn * hidden_states, axis=1)
    return ctx, attn


if __name__ == "__main__":
    B, S, H = 4, 8, 32
    key = jax.random.PRNGKey(0)
    k_x, k_w, k_b = jax.random.split(key, 3)

    hidden_states = jax.random.normal(k_x, (B, S, H), dtype=jnp.float32)

    # Deterministic nn.Linear(hidden_size, 1) init: U(-1/sqrt(H), 1/sqrt(H)).
    bound = 1.0 / (H ** 0.5)
    weight = jax.random.uniform(k_w, (1, H), jnp.float32, -bound, bound)
    bias = jax.random.uniform(k_b, (1,), jnp.float32, -bound, bound)

    ctx, attn = common_attention_layer(hidden_states, weight, bias)
    ctx = jax.block_until_ready(ctx)
    attn = jax.block_until_ready(attn)

    ctx_ref, attn_ref = _reference(hidden_states, weight, bias)
    assert ctx.shape == (B, H)
    assert attn.shape == (B, S, 1)
    # Tolerance accounts for the EUP approximate reciprocal in the softmax
    # denominator (~1e-4 relative shift); results are otherwise f32-exact.
    assert jnp.allclose(ctx, ctx_ref, atol=2e-3, rtol=2e-3)
    assert jnp.allclose(attn, attn_ref, atol=2e-3, rtol=2e-3)

    print("KERNEL_OK")
</pallas_src>

<mosaic_0001>
module attributes {stable_mosaic.version = 11 : i64} {
  func.func @_attn_kernel(%arg0: i32, %arg1: memref<4x8x32xf32, #tpu.memory_space<vmem>>, %arg2: memref<1x32xf32, #tpu.memory_space<vmem>>, %arg3: memref<1xf32, #tpu.memory_space<smem>>, %arg4: memref<4x32xf32, #tpu.memory_space<vmem>>, %arg5: memref<4x8xf32, #tpu.memory_space<vmem>>) attributes {dimension_semantics = [#tpu.dimension_semantics<parallel>], iteration_bounds = array<i64: 1>, scalar_prefetch = 0 : i64, scratch_operands = 0 : i64, tpu.core_type = #tpu.core_type<tc>, window_params = [{transform_indices = @transform_0, window_bounds = array<i64: 4, 8, 32>}, {pipeline_mode = #tpu.pipeline_mode<synchronous>, transform_indices = @transform_1, window_bounds = array<i64: 1, 32>}, {transform_indices = @transform_2, window_bounds = array<i64: 1>}, {transform_indices = @transform_3, window_bounds = array<i64: 4, 32>}, {transform_indices = @transform_4, window_bounds = array<i64: 4, 8>}]} {
    %c0 = arith.constant 0 : index
    %c0_0 = arith.constant 0 : index
    %c0_1 = arith.constant 0 : index
    %0 = vector.load %arg1[%c0, %c0_0, %c0_1] : memref<4x8x32xf32, #tpu.memory_space<vmem>>, vector<4x8x32xf32>
    %c0_2 = arith.constant 0 : index
    %c0_3 = arith.constant 0 : index
    %1 = vector.load %arg2[%c0_2, %c0_3] : memref<1x32xf32, #tpu.memory_space<vmem>>, vector<1x32xf32>
    %c0_4 = arith.constant 0 : index
    %2 = memref.load %arg3[%c0_4] : memref<1xf32, #tpu.memory_space<smem>>
    %3 = vector.shape_cast %1 : vector<1x32xf32> to vector<1x1x32xf32>
    %4 = vector.broadcast %3 : vector<1x1x32xf32> to vector<4x8x32xf32>
    %5 = arith.mulf %0, %4 : vector<4x8x32xf32>
    %cst = arith.constant dense<0.000000e+00> : vector<4x8xf32>
    %6 = vector.multi_reduction <add>, %5, %cst [2] : vector<4x8x32xf32> to vector<4x8xf32>
    %7 = vector.broadcast %2 : f32 to vector<4x8xf32>
    %8 = arith.addf %6, %7 : vector<4x8xf32>
    %cst_5 = arith.constant dense<0xFF800000> : vector<4xf32>
    %9 = vector.multi_reduction <maximumf>, %8, %cst_5 [1] : vector<4x8xf32> to vector<4xf32>
    %10 = vector.shape_cast %9 : vector<4xf32> to vector<4x1xf32>
    %11 = vector.broadcast %10 : vector<4x1xf32> to vector<4x8xf32>
    %12 = arith.subf %8, %11 : vector<4x8xf32>
    %13 = math.exp %12 : vector<4x8xf32>
    %cst_6 = arith.constant dense<0.000000e+00> : vector<4xf32>
    %14 = vector.multi_reduction <add>, %13, %cst_6 [1] : vector<4x8xf32> to vector<4xf32>
    %15 = vector.shape_cast %14 : vector<4xf32> to vector<4x1xf32>
    %16 = tpu.reciprocal %15 {approx = true} : vector<4x1xf32> -> vector<4x1xf32>
    %17 = vector.broadcast %16 : vector<4x1xf32> to vector<4x8xf32>
    %18 = arith.mulf %13, %17 : vector<4x8xf32>
    %19 = vector.shape_cast %18 : vector<4x8xf32> to vector<4x8x1xf32>
    %20 = vector.broadcast %19 : vector<4x8x1xf32> to vector<4x8x32xf32>
    %21 = arith.mulf %20, %0 : vector<4x8x32xf32>
    %cst_7 = arith.constant dense<0.000000e+00> : vector<4x32xf32>
    %22 = vector.multi_reduction <add>, %21, %cst_7 [1] : vector<4x8x32xf32> to vector<4x32xf32>
    %c0_8 = arith.constant 0 : index
    %c0_9 = arith.constant 0 : index
    %23 = vector.load %arg4[%c0_8, %c0_9] : memref<4x32xf32, #tpu.memory_space<vmem>>, vector<4x32xf32>
    tpu.vector_store %arg4[%c0_8, %c0_9], %22 {strides = array<i32>} : memref<4x32xf32, #tpu.memory_space<vmem>>, vector<4x32xf32>,
    %c0_10 = arith.constant 0 : index
    %c0_11 = arith.constant 0 : index
    %24 = vector.load %arg5[%c0_10, %c0_11] : memref<4x8xf32, #tpu.memory_space<vmem>>, vector<4x8xf32>
    tpu.vector_store %arg5[%c0_10, %c0_11], %18 {strides = array<i32>} : memref<4x8xf32, #tpu.memory_space<vmem>>, vector<4x8xf32>,
    return
  }
  func.func @transform_0(%arg0: i32) -> (i32, i32, i32) {
    %c0_i32 = arith.constant 0 : i32
    %c0_i32_0 = arith.constant 0 : i32
    %c0_i32_1 = arith.constant 0 : i32
    return %arg0, %c0_i32, %c0_i32_0 : i32, i32, i32
  }
  func.func @transform_1(%arg0: i32) -> (i32, i32) {
    %c0_i32 = arith.constant 0 : i32
    %c0_i32_0 = arith.constant 0 : i32
    %c0_i32_1 = arith.constant 0 : i32
    return %c0_i32, %c0_i32_0 : i32, i32
  }
  func.func @transform_2(%arg0: i32) -> i32 {
    %c0_i32 = arith.constant 0 : i32
    %c0_i32_0 = arith.constant 0 : i32
    return %c0_i32 : i32
  }
  func.func @transform_3(%arg0: i32) -> (i32, i32) {
    %c0_i32 = arith.constant 0 : i32
    %c0_i32_0 = arith.constant 0 : i32
    return %arg0, %c0_i32 : i32, i32
  }
  func.func @transform_4(%arg0: i32) -> (i32, i32) {
    %c0_i32 = arith.constant 0 : i32
    %c0_i32_0 = arith.constant 0 : i32
    return %arg0, %c0_i32 : i32, i32
  }
}

</mosaic_0001>

<bundles_post_ra>
// kernel: tpu_custom_call.1
= control target key start
LH: loop header
LB: loop body
LE: loop exit
PB: predicated region body
PF: predicated region fallthrough
CT: control target
= control target key end

     0   :  { %11 = vsyncpa [#allocation4], 0  ;;  %s534_s0 = inlined_call_operand.hbm [shape: f32[4,8,32], index: 0, kind: input, shape index: {}]   ;;  %s535_s1 = inlined_call_operand.vmem [shape: f32[1,32], index: 1, kind: input, shape index: {}]   ;;  %s536_s2 = inlined_call_operand.<no memory space> [shape: f32[1], index: 2, kind: input, shape index: {}]   ;;  %s537_s3 = inlined_call_operand.hbm [shape: f32[4,32], index: 3, kind: output, shape index: {0}]   ;;  %s538_s4 = inlined_call_operand.hbm [shape: f32[4,8], index: 4, kind: output, shape index: {1}]  }
   0x1   :  { %12 = vsyncpa [#allocation5], 0 }
   0x2   :  { %13 = vsyncpa [#allocation8], 0  ;;  %s401_s15 = smov [#allocation3]   ;;  %s329_s19 = scalar_lea.hbm %s534_s0, 512 }
   0x3   :  { %s19_s16 = sshll.u32 %s401_s15, 4  ;;  %p330_p0 = scmp.ne.s32.totalorder %s534_s0, %s329_s19  ;;  %s20_s16 = int_to_ptr.vmem [resolvable:$true] %s19_s16 }
   0x4   :  { %p333_p1 = scmp.lt.u32.totalorder %s329_s19, %s534_s0 }
   0x6   :  { %p335_p2 = pnand %p333_p1, %p330_p0 }
   0x8   :  { %338 = shalt.err (!%p335_p2)
}
   0x9   :  { %s339_s24 = scalar_lea.vmem %s20_s16, 512  ;;  %p344_p4 = scmp.lt.s32.totalorder %s20_s16, %s20_s16 }
   0xa   :  { %p340_p3 = scmp.ne.s32.totalorder %s20_s16, %s339_s24  ;;  %p345_p5 = scmp.lt.s32.totalorder %s339_s24, %s339_s24 }
   0xc   :  { %p346_p6 = por %p345_p5, %p344_p4 }
   0xe   :  { %p347_p7 = pnand %p346_p6, %p340_p3 }
  0x10   :  { %350 = shalt.err (!%p347_p7)
}
  0x11   :  { %s402_s25 = smov 128   ;;  %s403_s26 = smov 8  }
  0x12   :  { %25 = dma.hbm_to_vmem [thread:$0]  %s534_s0, 512, %s20_s16, [#allocation4], %s402_s25, %s402_s25, %s403_s26  }
  0x13   :  { %395 = dma.done.wait [#allocation4], 512  }
  0x14   :  { %396 = vsyncadd [#allocation4], 4294966784  ;;  %v444_v0 = vld [vmem:[#allocation3] sm:$0xff]  ;;  %vm49_vm0 = vcmask 261120   ;;  %v449_v2 = vld [vmem:[#allocation3 + $0x10] sm:$0xff]  ;;  %v71_v13 = vlaneseq  ;;  %v62_v16 = vstv %s536_s2  ;;  %vm89_vm1 = vcmask 1041409  }
  0x15   :  { %v310_v1 = vld [vmem:[%s535_s1] ss:$0 sm:$0xff]  ;;  %v453_v5 = vld [vmem:[#allocation3 + $0x8] sm:$0xff]  ;;  %v455_v6 = vld [vmem:[#allocation3 + $0x18] sm:$0xff]  ;;  %vm91_vm2 = vcmask 1042434   ;;  %vm93_vm3 = vcmask 1043459  }
  0x16   :  { %v45_v3 = vmul.f32 %v310_v1, %v444_v0  ;;  %v47_v4 = vmul.f32 %v310_v1, %v449_v2  ;;  %v46_v7 = vmul.f32 %v310_v1, %v453_v5  ;;  %v48_v8 = vmul.f32 %v310_v1, %v455_v6  ;;  %s405_s2 = smov [#allocation7]  }
  0x17   :  { %v72_v14 = vand.u32 127, %v71_v13  ;;  %v463_v15 = vshrl.u32 %v71_v13, 7  ;;  %vm96_vm4 = vcmask 60416   ;;  %v404_v34 = vmov 0   ;;  %s297_s5 = sshll.u32 %s405_s2, 4  ;;  %s298_s5 = int_to_ptr.vmem [resolvable:$true] %s297_s5 }
  0x18   :  { %v50_v9 = vsel %vm49_vm0, %v45_v3, 0.0  ;;  %v56_v10 = vsel %vm49_vm0, %v47_v4, 0.0  ;;  %v53_v11 = vsel %vm49_vm0, %v46_v7, 0.0  ;;  %v59_v12 = vsel %vm49_vm0, %v48_v8, 0.0  ;;  %318 = vset.pattern.permute.xlu0 %v404_v34  ;;  %317 = vset.pattern.permute.xlu1 %v404_v34  ;;  %s351_s6 = scalar_lea.vmem %s298_s5, 64  ;;  %p356_p9 = scmp.lt.s32.totalorder %s298_s5, %s298_s5 }
  0x19   :  { %51 = vadd.xlane.f32.xlu0 %v50_v9  ;;  %57 = vadd.xlane.f32.xlu1 %v56_v10  ;;  %v469_v19 = vsub.s32 %v72_v14, %v463_v15  ;;  %v103_v35 = vsub.s32 0, %v463_v15  ;;  %v107_v36 = vsub.s32 1, %v463_v15  ;;  %v111_v37 = vsub.s32 2, %v463_v15  ;;  %p352_p8 = scmp.ne.s32.totalorder %s298_s5, %s351_s6  ;;  %p357_p10 = scmp.lt.s32.totalorder %s351_s6, %s351_s6 }
  0x1a   :  { %v115_v38 = vsub.s32 3, %v463_v15 }
  0x1b   :  { %p358_p11 = por %p357_p10, %p356_p9 }
  0x1d   :  { %54 = vadd.xlane.f32.xlu0 %v53_v11  ;;  %60 = vadd.xlane.f32.xlu1 %v59_v12  ;;  %p359_p12 = pnand %p358_p11, %p352_p8 }
  0xa6   :  { %v52_v17 = vpop.xlane.xlu0 %51  ;;  %v58_v18 = vpop.xlane.xlu1 %57 }
  0xa7   :  { %v63_v20 = vadd.f32 %v62_v16, %v52_v17  ;;  %v65_v21 = vadd.f32 %v62_v16, %v58_v18 }
  0xa9   :  { %v76_v26 = vrot.slane %v63_v20, %v469_v19  ;;  %v84_v29 = vrot.slane %v65_v21, %v469_v19 }
  0xaa   :  { %v55_v22 = vpop.xlane.xlu0 %54  ;;  %v61_v23 = vpop.xlane.xlu1 %60 }
  0xab   :  { %v64_v24 = vadd.f32 %v62_v16, %v55_v22  ;;  %v66_v25 = vadd.f32 %v62_v16, %v61_v23 }
  0xad   :  { %v80_v27 = vrot.slane %v64_v24, %v469_v19  ;;  %v88_v28 = vrot.slane %v66_v25, %v469_v19 }
  0xaf   :  { %v90_v30 = vsel %vm89_vm1, %v80_v27, %v76_v26 }
  0xb0   :  { %v92_v31 = vsel %vm91_vm2, %v84_v29, %v90_v30 }
  0xb1   :  { %v94_v32 = vsel %vm93_vm3, %v88_v28, %v92_v31 }
  0xb2   :  { %v97_v33 = vsel %vm96_vm4, %v94_v32, -inf }
  0xb3   :  { %98 = vmax.xlane.f32.xlu0 %v97_v33 }
 0x140   :  { %v99_v39 = vpop.xlane.xlu0 %98 }
 0x141   :  { %v104_v40 = vrot.slane %v99_v39, %v103_v35  ;;  %v108_v41 = vrot.slane %v99_v39, %v107_v36  ;;  %v112_v42 = vrot.slane %v99_v39, %v111_v37  ;;  %v116_v43 = vrot.slane %v99_v39, %v115_v38 }
 0x143   :  { %v121_v44 = vsub.f32 %v63_v20, %v104_v40  ;;  %v122_v45 = vsub.f32 %v64_v24, %v108_v41  ;;  %v123_v46 = vsub.f32 %v65_v21, %v112_v42  ;;  %v124_v49 = vsub.f32 %v66_v25, %v116_v43 }
 0x145   :  { %v125_v47 = vmul.f32 1.442695, %v121_v44  ;;  %v127_v48 = vmul.f32 1.442695, %v122_v45  ;;  %v129_v50 = vmul.f32 1.442695, %v123_v46 }
 0x146   :  { %v131_v51 = vmul.f32 1.442695, %v124_v49 }
 0x147   :  { %319 = vpow2.f32 %v125_v47 }
 0x148   :  { %321 = vpow2.f32 %v127_v48 }
 0x149   :  { %323 = vpow2.f32 %v129_v50 }
 0x14a   :  { %325 = vpow2.f32 %v131_v51 }
 0x151   :  { %v320_v52 = vpop.eup %319 }
 0x152   :  { %v322_v53 = vpop.eup %321  ;;  %138 = vperm.xlu1 %317, %v320_v52  }
 0x153   :  { %141 = vperm.xlu0 %318, %v322_v53   ;;  %v324_v54 = vpop.eup %323 }
 0x154   :  { %v326_v55 = vpop.eup %325 }
 0x156   :  { %144 = vperm.xlu1 %317, %v324_v54  }
 0x15a   :  { %147 = vperm.xlu1 %317, %v326_v55  }
 0x1d1   :  { %v139_v56 = vpop.permute.xlu1 %138 }
 0x1d2   :  { %v142_v57 = vpop.permute.xlu0 %141  ;;  %v152_v60 = vrot.slane %v139_v56, %v469_v19 }
 0x1d3   :  { %v156_v59 = vrot.slane %v142_v57, %v469_v19 }
 0x1d5   :  { %v145_v58 = vpop.permute.xlu1 %144  ;;  %v165_v63 = vsel %vm89_vm1, %v156_v59, %v152_v60 }
 0x1d6   :  { %v160_v61 = vrot.slane %v145_v58, %v469_v19 }
 0x1d8   :  { %v166_v3 = vsel %vm91_vm2, %v160_v61, %v165_v63 }
 0x1d9   :  { %v148_v62 = vpop.permute.xlu1 %147 }
 0x1da   :  { %v164_v1 = vrot.slane %v148_v62, %v469_v19 }
 0x1dc   :  { %v167_v4 = vsel %vm93_vm3, %v164_v1, %v166_v3 }
 0x1dd   :  { %v169_v7 = vsel %vm96_vm4, %v167_v4, 0.0 }
 0x1de   :  { %170 = vadd.xlane.f32.xlu1 %v169_v7 }
 0x26b   :  { %v171_v8 = vpop.xlane.xlu1 %170 }
 0x26c   :  { %327 = vrcp.f32 %v171_v8 }
 0x276   :  { %v328_v9 = vpop.eup %327 }
 0x277   :  { %v177_v10 = vrot.slane %v328_v9, %v103_v35  ;;  %v181_v12 = vrot.slane %v328_v9, %v107_v36  ;;  %v185_v14 = vrot.slane %v328_v9, %v111_v37  ;;  %v189_v16 = vrot.slane %v328_v9, %v115_v38 }
 0x279   :  { %v194_v11 = vmul.f32 %v320_v52, %v177_v10  ;;  %v195_v13 = vmul.f32 %v322_v53, %v181_v12  ;;  %v196_v15 = vmul.f32 %v324_v54, %v185_v14  ;;  %v197_v17 = vmul.f32 %v326_v55, %v189_v16 }
 0x27b   :  { %200 = vperm.xlu0 %318, %v194_v11  }
 0x27f   :  { %205 = vperm.xlu0 %318, %v195_v13  }
 0x283   :  { %210 = vperm.xlu0 %318, %v196_v15  }
 0x287   :  { %215 = vperm.xlu0 %318, %v197_v17  }
 0x2fa   :  { %v201_v18 = vpop.permute.xlu0 %200 }
 0x2fb   :  { %v218_v20 = vmul.f32 %v201_v18, %v444_v0  ;;  %v263_v0 = vrot.slane %v201_v18, %v469_v19 }
 0x2fd   :  { %v222_v21 = vsel %vm49_vm0, %v218_v20, 0.0 }
 0x2fe   :  { %v223_v22 = vrot.slane %v222_v21, 4  ;;  %v206_v23 = vpop.permute.xlu0 %205 }
 0x2ff   :  { %v219_v24 = vmul.f32 %v206_v23, %v453_v5  ;;  %v267_v29 = vrot.slane %v206_v23, %v469_v19 }
 0x300   :  { %v224_v26 = vadd.f32 %v223_v22, %v222_v21 }
 0x301   :  { %v229_v25 = vsel %vm49_vm0, %v219_v24, 0.0  ;;  %v276_v37 = vsel %vm89_vm1, %v267_v29, %v263_v0 }
 0x302   :  { %v230_v27 = vrot.slane %v229_v25, 4  ;;  %v211_v28 = vpop.permute.xlu0 %210  ;;  %v225_v34 = vrot.slane %v224_v26, 2 }
 0x303   :  { %v220_v30 = vmul.f32 %v211_v28, %v449_v2  ;;  %v271_v32 = vrot.slane %v211_v28, %v469_v19 }
 0x304   :  { %v231_v31 = vadd.f32 %v230_v27, %v229_v25  ;;  %v226_v44 = vadd.f32 %v225_v34, %v224_v26 }
 0x305   :  { %v236_v33 = vsel %vm49_vm0, %v220_v30, 0.0  ;;  %v277_v41 = vsel %vm91_vm2, %v271_v32, %v276_v37 }
 0x306   :  { %v232_v5 = vrot.slane %v231_v31, 2  ;;  %v237_v35 = vrot.slane %v236_v33, 4  ;;  %v216_v36 = vpop.permute.xlu0 %215 }
 0x307   :  { %v221_v38 = vmul.f32 %v216_v36, %v455_v6  ;;  %v275_v39 = vrot.slane %v216_v36, %v469_v19 }
 0x308   :  { %v233_v2 = vadd.f32 %v232_v5, %v231_v31  ;;  %v238_v40 = vadd.f32 %v237_v35, %v236_v33 }
 0x309   :  { %v243_v42 = vsel %vm49_vm0, %v221_v38, 0.0  ;;  %v278_v43 = vsel %vm93_vm3, %v275_v39, %v277_v41 }
 0x30a   :  { %v239_v45 = vrot.slane %v238_v40, 2  ;;  %v244_v46 = vrot.slane %v243_v42, 4  ;;  %280 = vst.msk [vmem:[#allocation7] sm:$0xf] %vm96_vm4, %v278_v43 }
 0x30b   :  { %362 = shalt.err (!%p359_p12)
}
 0x30c   :  { %s363_s9 = scalar_lea.hbm %s538_s4, 64 }
 0x30d   :  { %p364_p13 = scmp.ne.s32.totalorder %s538_s4, %s363_s9  ;;  %p367_p0 = scmp.lt.u32.totalorder %s363_s9, %s538_s4 }
 0x30f   :  { %p369_p1 = pnand %p367_p0, %p364_p13 }
 0x311   :  { %372 = shalt.err (!%p369_p1)
}
 0x312   :  { %300 = dma.vmem_to_hbm [thread:$0]  %s298_s5, 64, %s538_s4, [#allocation8]   ;;  %v234_v6 = vrot.slane %v233_v2, 1  ;;  %v240_v19 = vadd.f32 %v239_v45, %v238_v40  ;;  %v245_v47 = vadd.f32 %v244_v46, %v243_v42  ;;  %v227_v48 = vrot.slane %v226_v44, 1 }
 0x313   :  { %s406_s16 = smov [#allocation6]   ;;  %vm258_vm5 = vcmask 257024  }
 0x314   :  { %v241_v49 = vrot.slane %v240_v19, 1  ;;  %v246_v50 = vrot.slane %v245_v47, 2  ;;  %v235_v51 = vadd.f32 %v234_v6, %v233_v2  ;;  %v228_v54 = vadd.f32 %v227_v48, %v226_v44  ;;  %s287_s17 = sshll.u32 %s406_s16, 4  ;;  %s288_s17 = int_to_ptr.vmem [resolvable:$true] %s287_s17 }
 0x315   :  { %s373_s4 = scalar_lea.vmem %s288_s17, 64  ;;  %p378_p3 = scmp.lt.s32.totalorder %s288_s17, %s288_s17 }
 0x316   :  { %v247_v52 = vadd.f32 %v246_v50, %v245_v47  ;;  %v242_v53 = vadd.f32 %v241_v49, %v240_v19  ;;  %v254_v57 = vsel %vm89_vm1, %v235_v51, %v228_v54  ;;  %p374_p2 = scmp.ne.s32.totalorder %s288_s17, %s373_s4  ;;  %p379_p4 = scmp.lt.s32.totalorder %s373_s4, %s373_s4 }
 0x318   :  { %v248_v55 = vrot.slane %v247_v52, 1  ;;  %v255_v58 = vsel %vm91_vm2, %v242_v53, %v254_v57  ;;  %p380_p5 = por %p379_p4, %p378_p3 }
 0x31a   :  { %v249_v56 = vadd.f32 %v248_v55, %v247_v52  ;;  %p381_p6 = pnand %p380_p5, %p374_p2 }
 0x31c   :  { %v256_v59 = vsel %vm93_vm3, %v249_v56, %v255_v58 }
 0x31d   :  { %259 = vst.msk [vmem:[#allocation6] sm:$0xf] %vm258_vm5, %v256_v59 }
 0x31e   :  { %384 = shalt.err (!%p381_p6)
}
 0x31f   :  { %s385_s20 = scalar_lea.hbm %s537_s3, 64 }
 0x320   :  { %p386_p7 = scmp.ne.s32.totalorder %s537_s3, %s385_s20  ;;  %p389_p8 = scmp.lt.u32.totalorder %s385_s20, %s537_s3 }
 0x322   :  { %p391_p9 = pnand %p389_p8, %p386_p7 }
 0x324   :  { %394 = shalt.err (!%p391_p9)
}
 0x325   :  { %290 = dma.vmem_to_hbm [thread:$0]  %s288_s17, 64, %s537_s3, [#allocation5]  }
 0x326   :  { %397 = dma.done.wait [#allocation5], 64  }
 0x327   :  { %398 = vsyncadd [#allocation5], 4294967232 }
 0x328   :  { %399 = dma.done.wait [#allocation8], 64  }
 0x329   :  { %400 = vsyncadd [#allocation8], 4294967232 }
 0x32a   :  { %307 = vsyncpa [#allocation4], 1 }
 0x32b   :  { %308 = vsyncpa [#allocation5], 1 }
 0x32c   :  { %309 = vsyncpa [#allocation8], 1 }

</bundles_post_ra>
